<compile_context>
chip_gen: v7x
topology: tpu7x:2x2x1
jax: 0.10.0
libtpu: 0.0.40
codegen_flags: <defaults>
</compile_context>

<pallas_src>
import functools
import math

import jax
import jax.numpy as jnp
from jax.experimental import pallas as pl
from jax.experimental.pallas import tpu as pltpu


def _round_up(x, m):
    return ((x + m - 1) // m) * m


def _classifier_kernel(tok_ref, emb_ref, wenc_ref, wattn_ref, v_ref,
                       wout_ref, bout_ref,
                       last_ref, wts_ref, yhat_ref,
                       *, mask_list, tb, seq):
    d = emb_ref.shape[-1]
    # (TB, T, D) -> (TB*T, D): stack all TB sequences so encoder/attention
    # matmuls have a tall M dimension (fills MXU sublanes).
    e = emb_ref[...].reshape(tb * seq, d)                              # bf16

    # "encoder": per-token tanh projection to 2H (bf16 operands, f32 accum).
    # TODO(synk): the reference encoder is an injected (bi-)LSTM; the
    # recurrence is replaced by a per-token projection.
    hidden = jnp.tanh(
        jnp.dot(e, wenc_ref[...],
                preferred_element_type=jnp.float32))                  # (TB*T, 2H) f32
    two_h = hidden.shape[-1]

    # additive (tanh) attention; scores via VPU multiply + lane reduction so
    # they land directly in a lane-dense (TB, T) layout.
    a = jnp.tanh(
        jnp.dot(hidden.astype(jnp.bfloat16), wattn_ref[...],
                preferred_element_type=jnp.float32))                  # (TB*T, A) f32
    a3 = a.reshape(tb, seq, a.shape[-1])                              # (TB, T, A)
    scores = jnp.sum(a3 * v_ref[...], axis=-1)                        # (TB, T) f32

    # padding mask computed in-kernel: masks = sum_i (input == mask_list[i]).
    mask = jnp.zeros((tb, seq), jnp.int32)
    for item in mask_list:
        mask = mask + (tok_ref[...] == item).astype(jnp.int32)
    scores = jnp.where(mask > 0, jnp.float32(-1e30), scores)

    # masked softmax over the sequence (lane) axis, kept in f32.
    m = jnp.max(scores, axis=-1, keepdims=True)
    p = jnp.exp(scores - m)
    w = p / jnp.sum(p, axis=-1, keepdims=True)                        # (TB, T)
    wts_ref[...] = w

    # last_layer[b] = sum_t w[b,t] * hidden[b,t,:] as a batched MXU
    # contraction: (TB,1,T) @ (TB,T,2H) -> (TB,1,2H).
    hidden3 = hidden.reshape(tb, seq, two_h)
    last = jnp.einsum("bqt,bth->bqh", w[:, None, :], hidden3,
                      preferred_element_type=jnp.float32)[:, 0, :]    # (TB, 2H)
    last_ref[...] = last

    # yhat = Linear(2H, O)(last_layer) — dense (TB, O) store slab.
    yhat_ref[...] = (
        jnp.dot(last, wout_ref[...], preferred_element_type=jnp.float32)
        + bout_ref[...])


def classifier_forward(token_ids, lengths, params, mask_list=(0,),
                       batch_tile=None):
    """Returns (last_layer, weights, yhat) like Model.forward."""
    # TODO(synk): lengths only defines T = max(lengths); masking relies on
    # pad-id membership in mask_list, matching the reference Model.
    del lengths
    B, T = token_ids.shape
    emb_table = params["embedding"]
    D = emb_table.shape[1]
    two_h = params["w_enc"].shape[1]
    A = params["w_attn"].shape[1]
    O = params["w_out"].shape[1]

    # Batch tiling: TB rows per grid step so TB*T rows feed the MXU and the
    # per-step pipeline overhead is amortized; TB is a multiple of 8 (sublane).
    if batch_tile is None:
        rows_target = max(8, pl.cdiv(256, T))          # aim for >=256 matmul rows
        batch_tile = min(_round_up(B, 8), _round_up(rows_target, 8))
    tb = batch_tile
    b_pad = _round_up(B, tb)

    tok = token_ids.astype(jnp.int32)
    if b_pad != B:
        pad_rows = jnp.full((b_pad - B, T), jnp.int32(mask_list[0]))
        tok = jnp.concatenate([tok, pad_rows], axis=0)

    # Embedding gather (bf16 to halve HBM traffic of the largest tensor).
    # TODO(synk): for large vocab / real dims, gather embedding rows inside the
    # kernel (scalar-prefetched ids + manual DMA) to skip this HBM round trip.
    emb = emb_table[tok].astype(jnp.bfloat16)                        # (b_pad, T, D)

    wenc = params["w_enc"].astype(jnp.bfloat16)                      # (D, 2H)
    wattn = params["w_attn"].astype(jnp.bfloat16)                    # (2H, A)
    v_row = params["v_attn"].reshape(1, A).astype(jnp.float32)       # (1, A)
    wout = params["w_out"].astype(jnp.float32)                       # (2H, O)
    bout = params["b_out"].reshape(1, O).astype(jnp.float32)         # (1, O)

    out_shapes = (
        jax.ShapeDtypeStruct((b_pad, two_h), jnp.float32),   # last_layer
        jax.ShapeDtypeStruct((b_pad, T), jnp.float32),       # attention weights
        jax.ShapeDtypeStruct((b_pad, O), jnp.float32),       # yhat
    )

    grid_spec = pltpu.PrefetchScalarGridSpec(
        num_scalar_prefetch=0,
        grid=(b_pad // tb,),
        in_specs=[
            pl.BlockSpec((tb, T), lambda b: (b, 0)),          # token ids
            pl.BlockSpec((tb, T, D), lambda b: (b, 0, 0)),    # embedded tokens (bf16)
            pl.BlockSpec((D, two_h), lambda b: (0, 0)),       # encoder weight
            pl.BlockSpec((two_h, A), lambda b: (0, 0)),       # attention weight
            pl.BlockSpec((1, A), lambda b: (0, 0)),           # attention vector (row)
            pl.BlockSpec((two_h, O), lambda b: (0, 0)),       # output weight
            pl.BlockSpec((1, O), lambda b: (0, 0)),           # output bias
        ],
        out_specs=[
            pl.BlockSpec((tb, two_h), lambda b: (b, 0)),
            pl.BlockSpec((tb, T), lambda b: (b, 0)),
            pl.BlockSpec((tb, O), lambda b: (b, 0)),
        ],
    )

    kernel = functools.partial(
        _classifier_kernel,
        mask_list=tuple(int(i) for i in mask_list),
        tb=tb, seq=T)

    last_layer, weights, yhat = pl.pallas_call(
        kernel,
        out_shape=out_shapes,
        grid_spec=grid_spec,
        compiler_params=pltpu.CompilerParams(
            dimension_semantics=("parallel",),
            vmem_limit_bytes=32 * 1024 * 1024),
    )(tok, emb, wenc, wattn, v_row, wout, bout)

    return last_layer[:B], weights[:B], yhat[:B]


def init_params(key, vocab_size, embed_dim, hidden_dim, attn_dim, output_dim):
    two_h = 2 * hidden_dim
    k1, k2, k3, k4, k5 = jax.random.split(key, 5)
    embedding = jax.random.normal(k1, (vocab_size, embed_dim), jnp.float32) * 0.1
    w_enc = jax.random.normal(k2, (embed_dim, two_h), jnp.float32) / math.sqrt(embed_dim)
    w_attn = jax.random.normal(k3, (two_h, attn_dim), jnp.float32) / math.sqrt(two_h)
    v_attn = jax.random.normal(k4, (attn_dim, 1), jnp.float32) / math.sqrt(attn_dim)
    # matches nn.Linear init in Model.__init__: uniform(-stdv, stdv), bias = 0
    stdv = 1.0 / math.sqrt(two_h)
    w_out = jax.random.uniform(k5, (two_h, output_dim), jnp.float32, -stdv, stdv)
    b_out = jnp.zeros((1, output_dim), jnp.float32)
    return dict(embedding=embedding, w_enc=w_enc, w_attn=w_attn,
                v_attn=v_attn, w_out=w_out, b_out=b_out)


def _reference(token_ids, params, mask_list):
    """Pure-JAX f32 reference of the same forward pass."""
    emb = params["embedding"][token_ids].astype(jnp.float32)
    hidden = jnp.tanh(emb @ params["w_enc"])
    a = jnp.tanh(hidden @ params["w_attn"])
    scores = (a @ params["v_attn"])[..., 0]
    mask = jnp.zeros(token_ids.shape, jnp.int32)
    for item in mask_list:
        mask = mask + (token_ids == item).astype(jnp.int32)
    scores = jnp.where(mask > 0, jnp.float32(-1e30), scores)
    w = jax.nn.softmax(scores, axis=-1)
    last = jnp.einsum("bt,bth->bh", w, hidden)
    yhat = last @ params["w_out"] + params["b_out"]
    return last, w, yhat


if __name__ == "__main__":
    B, T = 2, 8
    vocab_size, embed_dim, hidden_dim, attn_dim, output_dim = 50, 32, 16, 32, 4

    key = jax.random.PRNGKey(0)
    k_tok, k_par = jax.random.split(key)

    token_ids = jax.random.randint(k_tok, (B, T), 1, vocab_size, dtype=jnp.int32)
    # second sequence has length 6 -> positions 6,7 are pad token 0
    token_ids = token_ids.at[1, 6:].set(0)
    lengths = jnp.array([T, 6], dtype=jnp.int32)

    params = init_params(k_par, vocab_size, embed_dim, hidden_dim,
                         attn_dim, output_dim)

    last_layer, weights, yhat = classifier_forward(
        token_ids, lengths, params, mask_list=(0,))
    jax.block_until_ready((last_layer, weights, yhat))

    assert last_layer.shape == (B, 2 * hidden_dim)
    assert weights.shape == (B, T)
    assert yhat.shape == (B, output_dim)

    ref_last, ref_w, ref_yhat = _reference(token_ids, params, mask_list=(0,))
    assert bool(jnp.allclose(last_layer, ref_last, atol=5e-2, rtol=5e-2))
    assert bool(jnp.allclose(weights, ref_w, atol=5e-2, rtol=5e-2))
    assert bool(jnp.allclose(yhat, ref_yhat, atol=5e-2, rtol=5e-2))

    print("KERNEL_OK")
</pallas_src>

<mosaic_0001>
module attributes {stable_mosaic.version = 11 : i64} {
  func.func @_classifier_kernel(%arg0: i32, %arg1: memref<8x8xi32, #tpu.memory_space<vmem>>, %arg2: memref<8x8x32xbf16, #tpu.memory_space<vmem>>, %arg3: memref<32x32xbf16, #tpu.memory_space<vmem>>, %arg4: memref<32x32xbf16, #tpu.memory_space<vmem>>, %arg5: memref<1x32xf32, #tpu.memory_space<vmem>>, %arg6: memref<32x4xf32, #tpu.memory_space<vmem>>, %arg7: memref<1x4xf32, #tpu.memory_space<vmem>>, %arg8: memref<8x32xf32, #tpu.memory_space<vmem>>, %arg9: memref<8x8xf32, #tpu.memory_space<vmem>>, %arg10: memref<8x4xf32, #tpu.memory_space<vmem>>) attributes {dimension_semantics = [#tpu.dimension_semantics<parallel>], iteration_bounds = array<i64: 1>, scalar_prefetch = 0 : i64, scratch_operands = 0 : i64, tpu.core_type = #tpu.core_type<tc>, window_params = [{transform_indices = @transform_0, window_bounds = array<i64: 8, 8>}, {transform_indices = @transform_1, window_bounds = array<i64: 8, 8, 32>}, {pipeline_mode = #tpu.pipeline_mode<synchronous>, transform_indices = @transform_2, window_bounds = array<i64: 32, 32>}, {pipeline_mode = #tpu.pipeline_mode<synchronous>, transform_indices = @transform_3, window_bounds = array<i64: 32, 32>}, {pipeline_mode = #tpu.pipeline_mode<synchronous>, transform_indices = @transform_4, window_bounds = array<i64: 1, 32>}, {pipeline_mode = #tpu.pipeline_mode<synchronous>, transform_indices = @transform_5, window_bounds = array<i64: 32, 4>}, {pipeline_mode = #tpu.pipeline_mode<synchronous>, transform_indices = @transform_6, window_bounds = array<i64: 1, 4>}, {transform_indices = @transform_7, window_bounds = array<i64: 8, 32>}, {transform_indices = @transform_8, window_bounds = array<i64: 8, 8>}, {transform_indices = @transform_9, window_bounds = array<i64: 8, 4>}]} {
    %c0 = arith.constant 0 : index
    %c0_0 = arith.constant 0 : index
    %c0_1 = arith.constant 0 : index
    %0 = vector.load %arg2[%c0, %c0_0, %c0_1] : memref<8x8x32xbf16, #tpu.memory_space<vmem>>, vector<8x8x32xbf16>
    %1 = vector.shape_cast %0 : vector<8x8x32xbf16> to vector<64x32xbf16>
    %c0_2 = arith.constant 0 : index
    %c0_3 = arith.constant 0 : index
    %2 = vector.load %arg3[%c0_2, %c0_3] : memref<32x32xbf16, #tpu.memory_space<vmem>>, vector<32x32xbf16>
    %cst = arith.constant dense<0.000000e+00> : vector<64x32xf32>
    %3 = tpu.matmul %1, %2, %cst {dimension_numbers = #tpu.dot_dimension_numbers<[1], [0], [0], [1], [0, 0, 1, 1], [], []>} : vector<64x32xbf16>, vector<32x32xbf16>, vector<64x32xf32> -> vector<64x32xf32>
    %4 = math.tanh %3 : vector<64x32xf32>
    %5 = arith.truncf %4 : vector<64x32xf32> to vector<64x32xbf16>
    %c0_4 = arith.constant 0 : index
    %c0_5 = arith.constant 0 : index
    %6 = vector.load %arg4[%c0_4, %c0_5] : memref<32x32xbf16, #tpu.memory_space<vmem>>, vector<32x32xbf16>
    %cst_6 = arith.constant dense<0.000000e+00> : vector<64x32xf32>
    %7 = tpu.matmul %5, %6, %cst_6 {dimension_numbers = #tpu.dot_dimension_numbers<[1], [0], [0], [1], [0, 0, 1, 1], [], []>} : vector<64x32xbf16>, vector<32x32xbf16>, vector<64x32xf32> -> vector<64x32xf32>
    %8 = math.tanh %7 : vector<64x32xf32>
    %9 = vector.shape_cast %8 : vector<64x32xf32> to vector<8x8x32xf32>
    %c0_7 = arith.constant 0 : index
    %c0_8 = arith.constant 0 : index
    %10 = vector.load %arg5[%c0_7, %c0_8] : memref<1x32xf32, #tpu.memory_space<vmem>>, vector<1x32xf32>
    %11 = vector.shape_cast %10 : vector<1x32xf32> to vector<1x1x32xf32>
    %12 = vector.broadcast %11 : vector<1x1x32xf32> to vector<8x8x32xf32>
    %13 = arith.mulf %9, %12 : vector<8x8x32xf32>
    %cst_9 = arith.constant dense<0.000000e+00> : vector<8x8xf32>
    %14 = vector.multi_reduction <add>, %13, %cst_9 [2] : vector<8x8x32xf32> to vector<8x8xf32>
    %c0_i32 = arith.constant 0 : i32
    %15 = vector.broadcast %c0_i32 : i32 to vector<8x8xi32>
    %c0_10 = arith.constant 0 : index
    %c0_11 = arith.constant 0 : index
    %16 = vector.load %arg1[%c0_10, %c0_11] : memref<8x8xi32, #tpu.memory_space<vmem>>, vector<8x8xi32>
    %c0_i32_12 = arith.constant 0 : i32
    %17 = vector.broadcast %c0_i32_12 : i32 to vector<8x8xi32>
    %18 = arith.cmpi eq, %16, %17 : vector<8x8xi32>
    %19 = arith.extui %18 : vector<8x8xi1> to vector<8x8xi32>
    %20 = arith.addi %15, %19 : vector<8x8xi32>
    %c0_i32_13 = arith.constant 0 : i32
    %21 = vector.broadcast %c0_i32_13 : i32 to vector<8x8xi32>
    %22 = arith.cmpi sgt, %20, %21 : vector<8x8xi32>
    %cst_14 = arith.constant -1.000000e+30 : f32
    %23 = vector.broadcast %cst_14 : f32 to vector<8x8xf32>
    %24 = arith.select %22, %23, %14 : vector<8x8xi1>, vector<8x8xf32>
    %cst_15 = arith.constant dense<0xFF800000> : vector<8xf32>
    %25 = vector.multi_reduction <maximumf>, %24, %cst_15 [1] : vector<8x8xf32> to vector<8xf32>
    %26 = vector.shape_cast %25 : vector<8xf32> to vector<8x1xf32>
    %27 = vector.broadcast %26 : vector<8x1xf32> to vector<8x8xf32>
    %28 = arith.subf %24, %27 : vector<8x8xf32>
    %29 = math.exp %28 : vector<8x8xf32>
    %cst_16 = arith.constant dense<0.000000e+00> : vector<8xf32>
    %30 = vector.multi_reduction <add>, %29, %cst_16 [1] : vector<8x8xf32> to vector<8xf32>
    %31 = vector.shape_cast %30 : vector<8xf32> to vector<8x1xf32>
    %32 = vector.broadcast %31 : vector<8x1xf32> to vector<8x8xf32>
    %33 = arith.divf %29, %32 : vector<8x8xf32>
    %c0_17 = arith.constant 0 : index
    %c0_18 = arith.constant 0 : index
    %34 = vector.load %arg9[%c0_17, %c0_18] : memref<8x8xf32, #tpu.memory_space<vmem>>, vector<8x8xf32>
    tpu.vector_store %arg9[%c0_17, %c0_18], %33 {strides = array<i32>} : memref<8x8xf32, #tpu.memory_space<vmem>>, vector<8x8xf32>,
    %35 = vector.shape_cast %4 : vector<64x32xf32> to vector<8x8x32xf32>
    %36 = vector.shape_cast %33 : vector<8x8xf32> to vector<8x1x8xf32>
    "tpu.trace_start"() <{level = 10 : i32, message = "bqt,bth->bqh"}> : () -> ()
    %cst_19 = arith.constant dense<0.000000e+00> : vector<8x1x32xf32>
    %37 = tpu.matmul %36, %35, %cst_19 {dimension_numbers = #tpu.dot_dimension_numbers<[2], [1], [1], [2], [0, 0, 0, 1, 1, 2], [0], [0]>} : vector<8x1x8xf32>, vector<8x8x32xf32>, vector<8x1x32xf32> -> vector<8x1x32xf32>
    "tpu.trace_stop"() : () -> ()
    %38 = vector.shape_cast %37 : vector<8x1x32xf32> to vector<8x32xf32>
    %c0_20 = arith.constant 0 : index
    %c0_21 = arith.constant 0 : index
    %39 = vector.load %arg8[%c0_20, %c0_21] : memref<8x32xf32, #tpu.memory_space<vmem>>, vector<8x32xf32>
    tpu.vector_store %arg8[%c0_20, %c0_21], %38 {strides = array<i32>} : memref<8x32xf32, #tpu.memory_space<vmem>>, vector<8x32xf32>,
    %c0_22 = arith.constant 0 : index
    %c0_23 = arith.constant 0 : index
    %40 = vector.load %arg6[%c0_22, %c0_23] : memref<32x4xf32, #tpu.memory_space<vmem>>, vector<32x4xf32>
    %cst_24 = arith.constant dense<0.000000e+00> : vector<8x4xf32>
    %41 = tpu.matmul %38, %40, %cst_24 {dimension_numbers = #tpu.dot_dimension_numbers<[1], [0], [0], [1], [0, 0, 1, 1], [], []>} : vector<8x32xf32>, vector<32x4xf32>, vector<8x4xf32> -> vector<8x4xf32>
    %c0_25 = arith.constant 0 : index
    %c0_26 = arith.constant 0 : index
    %42 = vector.load %arg7[%c0_25, %c0_26] : memref<1x4xf32, #tpu.memory_space<vmem>>, vector<1x4xf32>
    %43 = vector.broadcast %42 : vector<1x4xf32> to vector<8x4xf32>
    %44 = arith.addf %41, %43 : vector<8x4xf32>
    %c0_27 = arith.constant 0 : index
    %c0_28 = arith.constant 0 : index
    %45 = vector.load %arg10[%c0_27, %c0_28] : memref<8x4xf32, #tpu.memory_space<vmem>>, vector<8x4xf32>
    tpu.vector_store %arg10[%c0_27, %c0_28], %44 {strides = array<i32>} : memref<8x4xf32, #tpu.memory_space<vmem>>, vector<8x4xf32>,
    return
  }
  func.func @transform_0(%arg0: i32) -> (i32, i32) {
    %c0_i32 = arith.constant 0 : i32
    %c0_i32_0 = arith.constant 0 : i32
    return %arg0, %c0_i32 : i32, i32
  }
  func.func @transform_1(%arg0: i32) -> (i32, i32, i32) {
    %c0_i32 = arith.constant 0 : i32
    %c0_i32_0 = arith.constant 0 : i32
    %c0_i32_1 = arith.constant 0 : i32
    return %arg0, %c0_i32, %c0_i32_0 : i32, i32, i32
  }
  func.func @transform_2(%arg0: i32) -> (i32, i32) {
    %c0_i32 = arith.constant 0 : i32
    %c0_i32_0 = arith.constant 0 : i32
    %c0_i32_1 = arith.constant 0 : i32
    return %c0_i32, %c0_i32_0 : i32, i32
  }
  func.func @transform_3(%arg0: i32) -> (i32, i32) {
    %c0_i32 = arith.constant 0 : i32
    %c0_i32_0 = arith.constant 0 : i32
    %c0_i32_1 = arith.constant 0 : i32
    return %c0_i32, %c0_i32_0 : i32, i32
  }
  func.func @transform_4(%arg0: i32) -> (i32, i32) {
    %c0_i32 = arith.constant 0 : i32
    %c0_i32_0 = arith.constant 0 : i32
    %c0_i32_1 = arith.constant 0 : i32
    return %c0_i32, %c0_i32_0 : i32, i32
  }
  func.func @transform_5(%arg0: i32) -> (i32, i32) {
    %c0_i32 = arith.constant 0 : i32
    %c0_i32_0 = arith.constant 0 : i32
    %c0_i32_1 = arith.constant 0 : i32
    return %c0_i32, %c0_i32_0 : i32, i32
  }
  func.func @transform_6(%arg0: i32) -> (i32, i32) {
    %c0_i32 = arith.constant 0 : i32
    %c0_i32_0 = arith.constant 0 : i32
    %c0_i32_1 = arith.constant 0 : i32
    return %c0_i32, %c0_i32_0 : i32, i32
  }
  func.func @transform_7(%arg0: i32) -> (i32, i32) {
    %c0_i32 = arith.constant 0 : i32
    %c0_i32_0 = arith.constant 0 : i32
    return %arg0, %c0_i32 : i32, i32
  }
  func.func @transform_8(%arg0: i32) -> (i32, i32) {
    %c0_i32 = arith.constant 0 : i32
    %c0_i32_0 = arith.constant 0 : i32
    return %arg0, %c0_i32 : i32, i32
  }
  func.func @transform_9(%arg0: i32) -> (i32, i32) {
    %c0_i32 = arith.constant 0 : i32
    %c0_i32_0 = arith.constant 0 : i32
    return %arg0, %c0_i32 : i32, i32
  }
}

</mosaic_0001>

<bundles_post_ra>
// kernel: tpu_custom_call.1
= control target key start
LH: loop header
LB: loop body
LE: loop exit
PB: predicated region body
PF: predicated region fallthrough
CT: control target
= control target key end

     0   :  { %15 = vsyncpa [#allocation3], 0  ;;  %s1756_s0 = inlined_call_operand.hbm [shape: s32[8,8], index: 0, kind: input, shape index: {}]   ;;  %s1757_s1 = inlined_call_operand.vmem [shape: bf16[8,8,32], index: 1, kind: input, shape index: {}]   ;;  %s1758_s2 = inlined_call_operand.hbm [shape: bf16[32,32], index: 2, kind: input, shape index: {}]   ;;  %s1759_s3 = inlined_call_operand.hbm [shape: bf16[32,32], index: 3, kind: input, shape index: {}]   ;;  %s1760_s4 = inlined_call_operand.vmem [shape: f32[1,32], index: 4, kind: input, shape index: {}]   ;;  %s1761_s5 = inlined_call_operand.vmem [shape: f32[32,4], index: 5, kind: input, shape index: {}]   ;;  %s1762_s6 = inlined_call_operand.vmem [shape: f32[1,4], index: 6, kind: input, shape index: {}]   ;;  %s1763_s7 = inlined_call_operand.hbm [shape: f32[8,32], index: 7, kind: output, shape index: {0}]   ;;  %s1764_s8 = inlined_call_operand.hbm [shape: f32[8,8], index: 8, kind: output, shape index: {1}]   ;;  %s1765_s9 = inlined_call_operand.vmem [shape: f32[8,4], index: 9, kind: output, shape index: {2}]  }
   0x1   :  { %16 = vsyncpa [#allocation6], 0 }
   0x2   :  { %17 = vsyncpa [#allocation4], 0 }
   0x3   :  { %18 = vsyncpa [#allocation10], 0  ;;  %s1503_s30 = smov [#allocation5]   ;;  %s1385_s13 = scalar_lea.hbm %s1758_s2, 256 }
   0x4   :  { %s36_s10 = sshll.u32 %s1503_s30, 4  ;;  %p1386_p0 = scmp.ne.s32.totalorder %s1758_s2, %s1385_s13  ;;  %s37_s10 = int_to_ptr.vmem [resolvable:$true] %s36_s10 }
   0x5   :  { %p1389_p1 = scmp.lt.u32.totalorder %s1385_s13, %s1758_s2 }
   0x7   :  { %p1391_p2 = pnand %p1389_p1, %p1386_p0 }
   0x9   :  { %1394 = shalt.err (!%p1391_p2)
}
   0xa   :  { %s1395_s18 = scalar_lea.vmem %s37_s10, 256  ;;  %p1400_p4 = scmp.lt.s32.totalorder %s37_s10, %s37_s10 }
   0xb   :  { %p1396_p3 = scmp.ne.s32.totalorder %s37_s10, %s1395_s18  ;;  %p1401_p5 = scmp.lt.s32.totalorder %s1395_s18, %s1395_s18 }
   0xd   :  { %p1402_p6 = por %p1401_p5, %p1400_p4 }
   0xf   :  { %p1403_p7 = pnand %p1402_p6, %p1396_p3 }
  0x11   :  { %1406 = shalt.err (!%p1403_p7)
}
  0x12   :  { %s1504_s19 = smov 64   ;;  %s1505_s20 = smov 4  }
  0x13   :  { %42 = dma.hbm_to_vmem [thread:$0]  %s1758_s2, 256, %s37_s10, [#allocation6], %s1504_s19, %s1504_s19, %s1505_s20  }
  0x14   :  { %s1506_s23 = smov [#allocation2]   ;;  %s1507_s25 = smov [#allocation7]  }
  0x15   :  { %s25_s24 = sshll.u32 %s1506_s23, 4  ;;  %s48_s26 = sshll.u32 %s1507_s25, 4  ;;  %s26_s24 = int_to_ptr.vmem [resolvable:$true] %s25_s24  ;;  %s49_s26 = int_to_ptr.vmem [resolvable:$true] %s48_s26 }
  0x16   :  { %s1407_s29 = scalar_lea.hbm %s1756_s0, 128 }
  0x17   :  { %p1408_p8 = scmp.ne.s32.totalorder %s1756_s0, %s1407_s29  ;;  %p1411_p9 = scmp.lt.u32.totalorder %s1407_s29, %s1756_s0 }
  0x19   :  { %p1413_p10 = pnand %p1411_p9, %p1408_p8 }
  0x1b   :  { %1416 = shalt.err (!%p1413_p10)
}
  0x1c   :  { %s1417_s2 = scalar_lea.vmem %s26_s24, 128  ;;  %p1422_p12 = scmp.lt.s32.totalorder %s26_s24, %s26_s24 }
  0x1d   :  { %p1418_p11 = scmp.ne.s32.totalorder %s26_s24, %s1417_s2  ;;  %p1423_p13 = scmp.lt.s32.totalorder %s1417_s2, %s1417_s2 }
  0x1f   :  { %p1424_p0 = por %p1423_p13, %p1422_p12 }
  0x21   :  { %p1425_p1 = pnand %p1424_p0, %p1418_p11 }
  0x23   :  { %1428 = shalt.err (!%p1425_p1)
}
  0x24   :  { %28 = dma.hbm_to_vmem [thread:$0]  %s1756_s0, 128, %s26_s24, [#allocation3]  }
  0x25   :  { %s1429_s17 = scalar_lea.hbm %s1759_s3, 256 }
  0x26   :  { %p1430_p2 = scmp.ne.s32.totalorder %s1759_s3, %s1429_s17  ;;  %p1433_p3 = scmp.lt.u32.totalorder %s1429_s17, %s1759_s3 }
  0x28   :  { %p1435_p4 = pnand %p1433_p3, %p1430_p2 }
  0x2a   :  { %1438 = shalt.err (!%p1435_p4)
}
  0x2b   :  { %s1439_s25 = scalar_lea.vmem %s49_s26, 256  ;;  %p1444_p6 = scmp.lt.s32.totalorder %s49_s26, %s49_s26 }
  0x2c   :  { %p1440_p5 = scmp.ne.s32.totalorder %s49_s26, %s1439_s25  ;;  %p1445_p7 = scmp.lt.s32.totalorder %s1439_s25, %s1439_s25 }
  0x2e   :  { %p1446_p8 = por %p1445_p7, %p1444_p6 }
  0x30   :  { %p1447_p9 = pnand %p1446_p8, %p1440_p5 }
  0x32   :  { %1450 = shalt.err (!%p1447_p9)
}
  0x33   :  { %54 = dma.hbm_to_vmem [thread:$0]  %s1759_s3, 256, %s49_s26, [#allocation6], %s1504_s19, %s1504_s19, %s1505_s20  }
  0x34   :  { %1495 = dma.done.wait [#allocation3], 128  }
  0x35   :  { %1496 = vsyncadd [#allocation3], 4294967168 }
  0x36   :  { %1497 = dma.done.wait [#allocation6], 512  }
  0x37   :  { %1498 = vsyncadd [#allocation6], 4294966784  ;;  %v1341_v0 = vld [vmem:[#allocation5] sm:$0xff]   ;;  %v1342_v1 = vld [vmem:[#allocation5 + $0x8] sm:$0xff]   ;;  %vm115_vm0 = vcmask 261120   ;;  %v1508_v7 = vmov 0.0   ;;  %v357_v62 = vlaneseq }
  0x38   :  { %1249 = vmatprep.subr.bf16.mxu0 %v1341_v0  ;;  %v1343_v2 = vld [vmem:[%s1757_s1] sm:$0xff]   ;;  %v1344_v3 = vld [vmem:[%s1757_s1 + $0x8] sm:$0xff]   ;;  %v1345_v4 = vld [vmem:[%s1757_s1 + $0x10] sm:$0xff]   ;;  %vm391_vm1 = vcmask 1041409   ;;  %vm393_vm2 = vcmask 1042434   ;;  %vm395_vm3 = vcmask 1043459  }
  0x39   :  { %1250 = vmatpush3.bf16.msra.mxu0 %v1341_v0  ;;  %1253 = vmatprep.mubr.msk.bf16.mxu0 %vm115_vm0, %v1343_v2  ;;  %v1346_v5 = vld [vmem:[%s1757_s1 + $0x18] sm:$0xff]   ;;  %v1348_v8 = vld [vmem:[#allocation7 + $0x8] sm:$0xff]   ;;  %v358_v63 = vand.u32 127, %v357_v62  ;;  %v360_v0 = vshrl.u32 %v357_v62, 7  ;;  %vm397_vm4 = vcmask 1044484   ;;  %vm399_vm5 = vcmask 1045509  }
  0x3a   :  { %1251 = vmatprep.subr.bf16.mxu0 %v1342_v1  ;;  %v1347_v6 = vld [vmem:[#allocation7] sm:$0xff]   ;;  %v1205_v35 = vld [vmem:[%s1760_s4] ss:$0 sm:$0xff]  ;;  %vm401_vm6 = vcmask 1046534   ;;  %vm403_vm7 = vcmask 1047559   ;;  %vm407_vm9 = vcmask 64512  }
  0x3b   :  { %1261 = vmatprep.subr.bf16.mxu1 %v1347_v6  ;;  %vm1509_vm10 = vmmov 0   ;;  %s1513_s18 = smov [#allocation9]  }
  0x3c   :  { %1262 = vmatpush3.bf16.msra.mxu1 %v1347_v6  ;;  %s1171_s21 = sshll.u32 %s1513_s18, 4  ;;  %s1172_s21 = int_to_ptr.vmem [resolvable:$true] %s1171_s21 }
  0x3d   :  { %1252 = vmatpush3.bf16.msra.mxu0 %v1342_v1  ;;  %1263 = vmatprep.subr.bf16.mxu1 %v1348_v8 }
  0x3e   :  { %1283 = vmatprep.subr.mxu0 %v1508_v7 }
  0x40   :  { %1254 = vmatmul.mubr.msk.bf16.vlgmr.msra.gmra.mrb[0].mxu0 %vm115_vm0, %v1344_v3  ;;  %1264 = vmatpush3.bf16.msra.mxu1 %v1348_v8  ;;  %v361_v3 = vsub.s32 %v358_v63, %v360_v0 }
  0x41   :  { %1257 = vmatprep.mubr.msk.bf16.mxu0 %vm115_vm0, %v1345_v4  ;;  %1273 = vmatprep.subr.mxu1 %v1508_v7 }
  0x48   :  { %1258 = vmatmul.mubr.msk.bf16.gmra.mrb[4].mxu0 %vm115_vm0, %v1346_v5 }
  0x49   :  { %1285 = vmatprep.mubr.msk.f32.mxu0 %vm1509_vm10, %v1508_v7 }
 0x113   :  { %v1255_v9 = vpop.f32.mrb[0].mxu0 }
 0x114   :  { %1349 = vtanh.f32 %v1255_v9  ;;  %v162_v10 = vpop.f32.mrb[1].mxu0 }
 0x115   :  { %1351 = vtanh.f32 %v162_v10  ;;  %v1256_v11 = vpop.f32.mrb[2].mxu0 }
 0x116   :  { %1353 = vtanh.f32 %v1256_v11  ;;  %v165_v12 = vpop.f32.mrb[3].mxu0 }
 0x117   :  { %1355 = vtanh.f32 %v165_v12 }
 0x11b   :  { %v1259_v13 = vpop.f32.mrb[4].mxu0 }
 0x11c   :  { %v178_v14 = vpop.f32.mrb[5].mxu0 }
 0x11d   :  { %1357 = vtanh.f32 %v178_v14  ;;  %v1260_v15 = vpop.f32.mrb[6].mxu0 }
 0x11e   :  { %v1350_v16 = vpop.eup %1349  ;;  %1359 = vtanh.f32 %v1260_v15  ;;  %v181_v17 = vpop.f32.mrb[7].mxu0 }
 0x11f   :  { %v1352_v18 = vpop.eup %1351  ;;  %1361 = vtanh.f32 %v181_v17  ;;  %1284 = vmatpush3.msra.mxu0 %v1350_v16 }
 0x120   :  { %v1624_v19 = vpop.eup %1353  ;;  %1363 = vtanh.f32 %v1259_v13  ;;  %1293 = vmatprep.subr.mxu0 %v1508_v7 }
 0x121   :  { %v1627_v20 = vpop.eup %1355  ;;  %v202_v22 = vpack.c.bf16 %v1624_v19, %v1350_v16 }
 0x122   :  { %v201_v21 = vpack.c.bf16 %v1627_v20, %v1352_v18 }
 0x124   :  { %1265 = vmatprep.mubr.msk.bf16.mxu1 %vm115_vm0, %v201_v21 }
 0x125   :  { %1266 = vmatmul.mubr.msk.bf16.vlgmr.msra.gmra.mrb[0].mxu1 %vm115_vm0, %v202_v22  ;;  %v345_v22 = vld [vmem:[#allocation2] sm:$0xff] }
 0x126   :  { %1274 = vmatpush3.msra.mxu1 %v1352_v18  ;;  %vm346_vm8 = vcmp.eq.s32.totalorder %v345_v22, 0 }
 0x127   :  { %v1633_v23 = vpop.eup %1357  ;;  %1278 = vmatprep.subr.mxu1 %v1508_v7 }
 0x128   :  { %v1636_v24 = vpop.eup %1359 }
 0x129   :  { %v1638_v25 = vpop.eup %1361 }
 0x12a   :  { %v1640_v26 = vpop.eup %1363  ;;  %v203_v27 = vpack.c.bf16 %v1638_v25, %v1633_v23 }
 0x12b   :  { %v204_v28 = vpack.c.bf16 %v1636_v24, %v1640_v26 }
 0x12c   :  { %1269 = vmatprep.mubr.msk.bf16.mxu1 %vm115_vm0, %v203_v27 }
 0x12d   :  { %1270 = vmatmul.mubr.msk.bf16.gmra.mrb[4].mxu1 %vm115_vm0, %v204_v28 }
 0x12e   :  { %1275 = vmatprep.mubr.msk.f32.mxu1 %vm1509_vm10, %v1508_v7 }
 0x1f8   :  { %v1267_v29 = vpop.f32.mrb[0].mxu1 }
 0x1f9   :  { %1365 = vtanh.f32 %v1267_v29  ;;  %v267_v30 = vpop.f32.mrb[1].mxu1 }
 0x1fa   :  { %1367 = vtanh.f32 %v267_v30  ;;  %v1268_v31 = vpop.f32.mrb[2].mxu1 }
 0x1fb   :  { %1369 = vtanh.f32 %v1268_v31  ;;  %v270_v32 = vpop.f32.mrb[3].mxu1 }
 0x1fc   :  { %1371 = vtanh.f32 %v270_v32 }
 0x200   :  { %v1271_v33 = vpop.f32.mrb[4].mxu1 }
 0x201   :  { %1373 = vtanh.f32 %v1271_v33  ;;  %v283_v34 = vpop.f32.mrb[5].mxu1 }
 0x202   :  { %1375 = vtanh.f32 %v283_v34  ;;  %v1272_v36 = vpop.f32.mrb[6].mxu1 }
 0x203   :  { %v1366_v37 = vpop.eup %1365  ;;  %1377 = vtanh.f32 %v1272_v36  ;;  %v286_v38 = vpop.f32.mrb[7].mxu1 }
 0x204   :  { %v1368_v39 = vpop.eup %1367  ;;  %1379 = vtanh.f32 %v286_v38  ;;  %v315_v40 = vmul.f32 %v1366_v37, %v1205_v35 }
 0x205   :  { %v1370_v41 = vpop.eup %1369  ;;  %v313_v42 = vmul.f32 %v1368_v39, %v1205_v35 }
 0x206   :  { %v1372_v43 = vpop.eup %1371  ;;  %v327_v44 = vsel %vm115_vm0, %v315_v40, 0.0  ;;  %v316_v45 = vmul.f32 %v1370_v41, %v1205_v35  ;;  %v1510_v41 = vmov 1966171168  }
 0x207   :  { %328 = vadd.xlane.f32.xlu1 %v327_v44  ;;  %v321_v46 = vsel %vm115_vm0, %v313_v42, 0.0  ;;  %v314_v47 = vmul.f32 %v1372_v43, %v1205_v35  ;;  %v423_v42 = vunpack.c.l.s4 %v1510_v41 }
 0x208   :  { %322 = vadd.xlane.f32.xlu0 %v321_v46  ;;  %v330_v48 = vsel %vm115_vm0, %v316_v45, 0.0 }
 0x209   :  { %v324_v50 = vsel %vm115_vm0, %v314_v47, 0.0  ;;  %v424_v43 = vunpack.c.0.s8 %v423_v42 }
 0x20b   :  { %v1374_v49 = vpop.eup %1373  ;;  %331 = vadd.xlane.f32.xlu1 %v330_v48  ;;  %v427_v44 = vsub.s32 %v424_v43, %v360_v0 }
 0x20c   :  { %v1376_v51 = vpop.eup %1375  ;;  %325 = vadd.xlane.f32.xlu0 %v324_v50  ;;  %v319_v57 = vmul.f32 %v1374_v49, %v1205_v35 }
 0x20d   :  { %v1378_v52 = vpop.eup %1377  ;;  %v317_v53 = vmul.f32 %v1376_v51, %v1205_v35 }
 0x20e   :  { %v1380_v54 = vpop.eup %1379  ;;  %v320_v59 = vmul.f32 %v1378_v52, %v1205_v35  ;;  %v339_v60 = vsel %vm115_vm0, %v319_v57, 0.0 }
 0x20f   :  { %v333_v55 = vsel %vm115_vm0, %v317_v53, 0.0  ;;  %v318_v56 = vmul.f32 %v1380_v54, %v1205_v35 }
 0x210   :  { %334 = vadd.xlane.f32.xlu0 %v333_v55  ;;  %v342_v61 = vsel %vm115_vm0, %v320_v59, 0.0 }
 0x211   :  { %v336_v58 = vsel %vm115_vm0, %v318_v56, 0.0  ;;  %v1071_v56 = vld [vmem:[%s1761_s5 + $0x8] sm:$0xff] }
 0x212   :  { %337 = vadd.xlane.f32.xlu1 %v336_v58  ;;  %v1511_v58 = vmov 0.0|0.0  }
 0x214   :  { %340 = vadd.xlane.f32.xlu0 %v339_v60 }
 0x216   :  { %343 = vadd.xlane.f32.xlu1 %v342_v61 }
 0x294   :  { %v329_v1 = vpop.xlane.xlu1 %328 }
 0x295   :  { %v323_v2 = vpop.xlane.xlu0 %322  ;;  %v370_v9 = vrot.slane %v329_v1, %v361_v3 }
 0x296   :  { %v362_v6 = vrot.slane %v323_v2, %v361_v3 }
 0x298   :  { %v332_v4 = vpop.xlane.xlu1 %331 }
 0x299   :  { %v326_v5 = vpop.xlane.xlu0 %325  ;;  %v374_v10 = vrot.slane %v332_v4, %v361_v3 }
 0x29a   :  { %v366_v8 = vrot.slane %v326_v5, %v361_v3 }
 0x29c   :  { %v392_v11 = vsel %vm391_vm1, %v366_v8, %v362_v6 }
 0x29d   :  { %v394_v12 = vsel %vm393_vm2, %v370_v9, %v392_v11  ;;  %v335_v13 = vpop.xlane.xlu0 %334 }
 0x29e   :  { %v396_v14 = vsel %vm395_vm3, %v374_v10, %v394_v12  ;;  %v378_v15 = vrot.slane %v335_v13, %v361_v3 }
 0x29f   :  { %v338_v16 = vpop.xlane.xlu1 %337 }
 0x2a0   :  { %v398_v17 = vsel %vm397_vm4, %v378_v15, %v396_v14  ;;  %v382_v18 = vrot.slane %v338_v16, %v361_v3 }
 0x2a1   :  { %v341_v21 = vpop.xlane.xlu0 %340 }
 0x2a2   :  { %v400_v27 = vsel %vm399_vm5, %v382_v18, %v398_v17  ;;  %v386_v28 = vrot.slane %v341_v21, %v361_v3 }
 0x2a3   :  { %v344_v29 = vpop.xlane.xlu1 %343 }
 0x2a4   :  { %v390_v30 = vrot.slane %v344_v29, %v361_v3  ;;  %v402_v31 = vsel %vm401_vm6, %v386_v28, %v400_v27 }
 0x2a6   :  { %v404_v32 = vsel %vm403_vm7, %v390_v30, %v402_v31 }
 0x2a7   :  { %v406_v33 = vsel %vm346_vm8, -1e+30, %v404_v32 }
 0x2a8   :  { %v408_v34 = vsel %vm407_vm9, %v406_v33, -inf }
 0x2a9   :  { %409 = vmax.xlane.f32.xlu0 %v408_v34 }
 0x336   :  { %v410_v35 = vpop.xlane.xlu0 %409 }
 0x337   :  { %v411_v36 = vsub.f32 %v406_v33, %v410_v35 }
 0x339   :  { %v412_v37 = vmul.f32 1.442695, %v411_v36 }
 0x33b   :  { %1381 = vpow2.f32 %v412_v37 }
 0x345   :  { %v1382_v38 = vpop.eup %1381 }
 0x346   :  { %v414_v39 = vsel %vm407_vm9, %v1382_v38, 0.0 }
 0x347   :  { %415 = vadd.xlane.f32.xlu1 %v414_v39 }
 0x3d4   :  { %v416_v40 = vpop.xlane.xlu1 %415 }
 0x3d5   :  { %1383 = vrcp.f32 %v416_v40 }
 0x3df   :  { %v1384_v45 = vpop.eup %1383 }
 0x3e0   :  { %v418_v46 = vmul.f32 %v1384_v45, %v1382_v38 }
 0x3e2   :  { %v421_v47 = vcombine.high %v418_v46, %v418_v46  ;;  %v428_v48 = vrot.slane %v418_v46, %v427_v44  ;;  %419 = vst.msk [vmem:[#allocation9] sm:$0xff] %vm407_vm9, %v418_v46 }
 0x3e4   :  { %v444_v49 = vrot.slane %v428_v48, %v427_v44  ;;  %v436_v50 = vcombine.high %v428_v48, %v428_v48  ;;  %v435_v52 = vrot.slane %v421_v47, %v427_v44 }
 0x3e6   :  { %1276 = vmatmul.mubr.msk.f32.vlgmr.msra.gmra.mrb[8].mxu1 %vm407_vm9, %v444_v49  ;;  %v466_v51 = vcombine.high %v444_v49, %v444_v49  ;;  %v458_v53 = vrot.slane %v436_v50, %v427_v44  ;;  %v451_v54 = vrot.slane %v435_v52, %v427_v44  ;;  %v437_v55 = vcombine.high %v435_v52, %v435_v52 }
 0x3e7   :  { %1279 = vmatpush3.msra.mxu1 %v1627_v20  ;;  %1280 = vmatprep.mubr.msk.f32.mxu1 %vm1509_vm10, %v1508_v7 }
 0x3e8   :  { %1286 = vmatmul.mubr.msk.f32.vlgmr.msra.gmra.mrb[8].mxu0 %vm407_vm9, %v466_v51  ;;  %1288 = vmatprep.subr.mxu1 %v1508_v7  ;;  %v468_v20 = vcombine.high %v458_v53, %v458_v53 }
 0x3e9   :  { %1294 = vmatpush3.msra.mxu0 %v1633_v23  ;;  %1295 = vmatprep.mubr.msk.f32.mxu0 %vm1509_vm10, %v1508_v7  ;;  %v467_v23 = vcombine.high %v451_v54, %v451_v54 }
 0x3ea   :  { %1281 = vmatmul.mubr.msk.f32.vlgmr.msra.gmra.mrb[10].mxu1 %vm407_vm9, %v458_v53  ;;  %1303 = vmatprep.subr.mxu0 %v1508_v7 }
 0x3eb   :  { %1289 = vmatpush3.msra.mxu1 %v1624_v19  ;;  %1290 = vmatprep.mubr.msk.f32.mxu1 %vm1509_vm10, %v1508_v7  ;;  %v465_v19 = vrot.slane %v437_v55, %v427_v44 }
 0x3ec   :  { %1296 = vmatmul.mubr.msk.f32.vlgmr.msra.gmra.mrb[10].mxu0 %vm407_vm9, %v451_v54  ;;  %1298 = vmatprep.subr.mxu1 %v1508_v7 }
 0x3ed   :  { %1304 = vmatpush3.msra.mxu0 %v1640_v26  ;;  %1305 = vmatprep.mubr.msk.f32.mxu0 %vm1509_vm10, %v1508_v7  ;;  %v469_v26 = vcombine.high %v465_v19, %v465_v19 }
 0x3ee   :  { %1291 = vmatmul.mubr.msk.f32.vlgmr.msra.gmra.mrb[12].mxu1 %vm407_vm9, %v468_v20  ;;  %1324 = vmatprep.subr.bf16.mxu0 %v1511_v58 }
 0x3ef   :  { %1299 = vmatpush3.msra.mxu1 %v1638_v25  ;;  %1300 = vmatprep.mubr.msk.f32.mxu1 %vm1509_vm10, %v1508_v7  ;;  %v1070_v25 = vld [vmem:[%s1761_s5] sm:$0xff] }
 0x3f0   :  { %1306 = vmatmul.mubr.msk.f32.vlgmr.msra.gmra.mrb[12].mxu0 %vm407_vm9, %v467_v23  ;;  %1308 = vmatprep.subr.mxu1 %v1508_v7  ;;  %v1325_v57 = vpack.c.bf16 %v1071_v56, %v1070_v25 }
 0x3f1   :  { %1321 = vmatprep.mubr.msk.f32.mxu0 %vm1509_vm10, %v1508_v7 }
 0x3f2   :  { %1301 = vmatmul.mubr.msk.f32.vlgmr.msra.gmra.mrb[14].mxu1 %vm407_vm9, %v465_v19  ;;  %1326 = vmatpush3.bf16.msra.mxu0 %v1325_v57 }
 0x3f3   :  { %1309 = vmatpush3.msra.mxu1 %v1636_v24  ;;  %1310 = vmatprep.mubr.msk.f32.mxu1 %vm1509_vm10, %v1508_v7  ;;  %v1072_v7 = vld [vmem:[%s1761_s5 + $0x10] sm:$0xff]  ;;  %v1073_v24 = vld [vmem:[%s1761_s5 + $0x18] sm:$0xff]  ;;  %s1512_s5 = smov [#allocation8]  }
 0x3f4   :  { %1327 = vmatprep.subr.bf16.mxu0 %v1511_v58  ;;  %v1328_v59 = vpack.c.bf16 %v1073_v24, %v1072_v7  ;;  %s1161_s17 = sshll.u32 %s1512_s5, 4  ;;  %s1162_s17 = int_to_ptr.vmem [resolvable:$true] %s1161_s17 }
 0x3f5   :  { %s1451_s22 = scalar_lea.vmem %s1162_s17, 128  ;;  %p1456_p11 = scmp.lt.s32.totalorder %s1162_s17, %s1162_s17 }
 0x3f6   :  { %1311 = vmatmul.mubr.msk.f32.vlgmr.msra.gmra.mrb[16].mxu1 %vm407_vm9, %v469_v26  ;;  %1329 = vmatpush3.bf16.msra.mxu0 %v1328_v59  ;;  %p1452_p10 = scmp.ne.s32.totalorder %s1162_s17, %s1451_s22  ;;  %p1457_p12 = scmp.lt.s32.totalorder %s1451_s22, %s1451_s22 }
 0x3f8   :  { %p1458_p13 = por %p1457_p12, %p1456_p11 }
 0x3fa   :  { %p1459_p0 = pnand %p1458_p13, %p1452_p10 }
 0x4b9   :  { %v538_v60 = vpop.f32.mrb[8].mxu1 }
 0x4ba   :  { %v1277_v61 = vpop.f32.mrb[9].mxu1 }
 0x4bb   :  { %v682_v62 = vpop.f32.mrb[8].mxu0 }
 0x4bc   :  { %v1287_v63 = vpop.f32.mrb[9].mxu0  ;;  %v1056_v3 = vrot.slane %v682_v62, 6 }
 0x4bd   :  { %v610_v0 = vpop.f32.mrb[10].mxu1 }
 0x4be   :  { %v1054_v1 = vrot.slane %v610_v0, 7  ;;  %v1282_v2 = vpop.f32.mrb[11].mxu1 }
 0x4bf   :  { %v826_v4 = vpop.f32.mrb[10].mxu0 }
 0x4c0   :  { %v1055_v5 = vsel %vm391_vm1, %v1054_v1, %v538_v60  ;;  %v1297_v6 = vpop.f32.mrb[11].mxu0  ;;  %v1060_v12 = vrot.slane %v826_v4, 4 }
 0x4c1   :  { %v754_v8 = vpop.f32.mrb[12].mxu1  ;;  %v1057_v9 = vsel %vm393_vm2, %v1056_v3, %v1055_v5 }
 0x4c2   :  { %v1058_v10 = vrot.slane %v754_v8, 5  ;;  %v1292_v11 = vpop.f32.mrb[13].mxu1 }
 0x4c3   :  { %v970_v13 = vpop.f32.mrb[12].mxu0 }
 0x4c4   :  { %v1059_v14 = vsel %vm395_vm3, %v1058_v10, %v1057_v9  ;;  %v1307_v15 = vpop.f32.mrb[13].mxu0  ;;  %v1064_v22 = vrot.slane %v970_v13, 2 }
 0x4c5   :  { %v898_v16 = vpop.f32.mrb[14].mxu1  ;;  %v1061_v17 = vsel %vm397_vm4, %v1060_v12, %v1059_v14 }
 0x4c6   :  { %v1062_v18 = vrot.slane %v898_v16, 3  ;;  %v1302_v21 = vpop.f32.mrb[15].mxu1 }
 0x4c8   :  { %v1063_v27 = vsel %vm399_vm5, %v1062_v18, %v1061_v17 }
 0x4c9   :  { %v1042_v28 = vpop.f32.mrb[16].mxu1  ;;  %v1065_v29 = vsel %vm401_vm6, %v1064_v22, %v1063_v27 }
 0x4ca   :  { %v1066_v30 = vrot.slane %v1042_v28, 1  ;;  %v1312_v31 = vpop.f32.mrb[17].mxu1 }
 0x4cc   :  { %v1067_v32 = vsel %vm403_vm7, %v1066_v30, %v1065_v29 }
 0x4cd   :  { %1069 = vst.msk [vmem:[#allocation8] sm:$0xff] %vm115_vm0, %v1067_v32  ;;  %1322 = vmatmul.mubr.msk.f32.vlgmr.msra.gmra.mrb[14].mxu0 %vm115_vm0, %v1067_v32 }
 0x4ce   :  { %1462 = shalt.err (!%p1459_p0)
}
 0x4cf   :  { %s1463_s0 = scalar_lea.hbm %s1763_s7, 128 }
 0x4d0   :  { %p1464_p1 = scmp.ne.s32.totalorder %s1763_s7, %s1463_s0  ;;  %p1467_p2 = scmp.lt.u32.totalorder %s1463_s0, %s1763_s7 }
 0x4d2   :  { %p1469_p3 = pnand %p1467_p2, %p1464_p1 }
 0x4d4   :  { %1472 = shalt.err (!%p1469_p3)
}
 0x4d5   :  { %1164 = dma.vmem_to_hbm [thread:$0]  %s1162_s17, 128, %s1763_s7, [#allocation4]  }
 0x4d6   :  { %s1473_s19 = scalar_lea.vmem %s1172_s21, 128  ;;  %p1478_p5 = scmp.lt.s32.totalorder %s1172_s21, %s1172_s21 }
 0x4d7   :  { %p1474_p4 = scmp.ne.s32.totalorder %s1172_s21, %s1473_s19  ;;  %p1479_p6 = scmp.lt.s32.totalorder %s1473_s19, %s1473_s19 }
 0x4d9   :  { %p1480_p7 = por %p1479_p6, %p1478_p5 }
 0x4db   :  { %p1481_p8 = pnand %p1480_p7, %p1474_p4 }
 0x4dd   :  { %1484 = shalt.err (!%p1481_p8)
}
 0x4de   :  { %s1485_s1 = scalar_lea.hbm %s1764_s8, 128 }
 0x4df   :  { %p1486_p9 = scmp.ne.s32.totalorder %s1764_s8, %s1485_s1  ;;  %p1489_p10 = scmp.lt.u32.totalorder %s1485_s1, %s1764_s8 }
 0x4e1   :  { %p1491_p11 = pnand %p1489_p10, %p1486_p9 }
 0x4e3   :  { %1494 = shalt.err (!%p1491_p11)
}
 0x4e4   :  { %1174 = dma.vmem_to_hbm [thread:$0]  %s1172_s21, 128, %s1764_s8, [#allocation10]   ;;  %v1214_v33 = vld [vmem:[%s1762_s6] ss:$0 sm:$0xff]  ;;  %vm1153_vm11 = vcmask 31744  }
 0x5a0   :  { %v1149_v34 = vpop.f32.mrb[14].mxu0 }
 0x5a1   :  { %v1150_v35 = vadd.f32 %v1214_v33, %v1149_v34  ;;  %v1323_v36 = vpop.f32.mrb[15].mxu0 }
 0x5a3   :  { %1154 = vst.msk [vmem:[%s1765_s9] sm:$0xff] %vm1153_vm11, %v1150_v35 }
 0x5a4   :  { %1499 = dma.done.wait [#allocation4], 128  }
 0x5a5   :  { %1500 = vsyncadd [#allocation4], 4294967168 }
 0x5a6   :  { %1501 = dma.done.wait [#allocation10], 128  }
 0x5a7   :  { %1502 = vsyncadd [#allocation10], 4294967168 }
 0x5a8   :  { %1185 = vsyncpa [#allocation3], 1 }
 0x5a9   :  { %1186 = vsyncpa [#allocation6], 1 }
 0x5aa   :  { %1187 = vsyncpa [#allocation4], 1 }
 0x5ab   :  { %1188 = vsyncpa [#allocation10], 1 }

</bundles_post_ra>
